<compile_context>
chip_gen: v7x
topology: tpu7x:2x2x1
jax: 0.10.0
libtpu: 0.0.40
codegen_flags: <defaults>
</compile_context>

<pallas_src>
import jax
import jax.numpy as jnp
from jax.experimental import pallas as pl
from jax.experimental.pallas import tpu as pltpu

BLOCK_B = 2048          # max batch-tile rows per grid step (multiple of 8)
SPLIT_THRESHOLD = 256   # above this, force >= 2 grid steps (v7x dual-TC)


def _round_up(n, m):
    return ((n + m - 1) // m) * m


def _mlp_kernel(x_ref, w1_ref, b1_ref, w2_ref, b2_ref, o_ref):
    # fc1: x @ W1 + b1 -> ReLU   (MXU matmul, f32 accumulation; K=310 is
    # handled/padded internally by Mosaic).
    h = jnp.dot(x_ref[...], w1_ref[...], preferred_element_type=jnp.float32)
    h = jnp.maximum(h + b1_ref[...], 0.0)
    # fc2: h @ W2 + b2 -> ReLU   (hidden stays in vregs; never touches HBM).
    o = jnp.dot(h, w2_ref[...], preferred_element_type=jnp.float32)
    o = jnp.maximum(o + b2_ref[...], 0.0)
    o_ref[...] = o.astype(o_ref.dtype)


def prepare_params(w1, b1, w2, b2):
    """One-time parameter prep (hoisted out of the per-call path).

    w1: (hidden_1, input_dim)  PyTorch nn.Linear layout
    b1: (hidden_1,)
    w2: (hidden_2, hidden_1)
    b2: (hidden_2,)
    Returns (w1_t, b1_2d, w2_t, b2_2d) ready for feature_extractor().
    """
    h1, _ = w1.shape
    h2, _ = w2.shape
    w1_t = w1.T.astype(jnp.float32)            # (input_dim, hidden_1)
    w2_t = w2.T.astype(jnp.float32)            # (hidden_1, hidden_2)
    b1_2d = b1.reshape(1, h1).astype(jnp.float32)
    b2_2d = b2.reshape(1, h2).astype(jnp.float32)
    return w1_t, b1_2d, w2_t, b2_2d


@jax.jit
def feature_extractor(x, w1_t, b1_2d, w2_t, b2_2d):
    """Fused forward pass. x: (B, input_dim) f32 -> (B, hidden_2) f32."""
    B, in_dim = x.shape
    _, h1 = w1_t.shape
    h2 = w2_t.shape[1]

    # Batch tile:
    #   * small B: a single full-batch tile (block dim == array dim is legal).
    #   * B > SPLIT_THRESHOLD: at least 2 grid steps (v7x dual-TC sharding),
    #     capped at BLOCK_B rows, always a multiple of 8 sublanes.
    if B <= SPLIT_THRESHOLD:
        tb = B
    else:
        tb = min(BLOCK_B, _round_up(pl.cdiv(B, 2), 8))
    grid = (pl.cdiv(B, tb),)

    cost = pl.CostEstimate(
        flops=2 * B * (in_dim * h1 + h1 * h2),
        transcendentals=0,
        bytes_accessed=4 * (B * in_dim + in_dim * h1 + h1 * h2 + h1 + h2 + B * h2),
    )

    return pl.pallas_call(
        _mlp_kernel,
        out_shape=jax.ShapeDtypeStruct((B, h2), jnp.float32),
        grid=grid,
        in_specs=[
            pl.BlockSpec((tb, in_dim), lambda i: (i, 0)),    # x: tiled on batch
            pl.BlockSpec((in_dim, h1), lambda i: (0, 0)),    # W1: VMEM-resident
            pl.BlockSpec((1, h1), lambda i: (0, 0)),         # b1: VMEM-resident
            pl.BlockSpec((h1, h2), lambda i: (0, 0)),        # W2: VMEM-resident
            pl.BlockSpec((1, h2), lambda i: (0, 0)),         # b2: VMEM-resident
        ],
        out_specs=pl.BlockSpec((tb, h2), lambda i: (i, 0)),
        compiler_params=pltpu.CompilerParams(
            dimension_semantics=("parallel",),               # v7x dual-TC sharding
        ),
        cost_estimate=cost,
    )(x, w1_t, b1_2d, w2_t, b2_2d)


def _reference(x, w1, b1, w2, b2):
    h = jnp.maximum(x @ w1.T + b1, 0.0)
    return jnp.maximum(h @ w2.T + b2, 0.0)


if __name__ == "__main__":
    input_dim, hidden_1, hidden_2 = 310, 64, 64
    batch = 8

    key = jax.random.PRNGKey(0)
    kx, kw1, kb1, kw2, kb2 = jax.random.split(key, 5)

    # Deterministic parameter init (Kaiming-uniform-like scale, as nn.Linear).
    lim1 = 1.0 / (input_dim ** 0.5)
    lim2 = 1.0 / (hidden_1 ** 0.5)
    x = jax.random.normal(kx, (batch, input_dim), dtype=jnp.float32)
    w1 = jax.random.uniform(kw1, (hidden_1, input_dim), minval=-lim1, maxval=lim1, dtype=jnp.float32)
    b1 = jax.random.uniform(kb1, (hidden_1,), minval=-lim1, maxval=lim1, dtype=jnp.float32)
    w2 = jax.random.uniform(kw2, (hidden_2, hidden_1), minval=-lim2, maxval=lim2, dtype=jnp.float32)
    b2 = jax.random.uniform(kb2, (hidden_2,), minval=-lim2, maxval=lim2, dtype=jnp.float32)

    # One-time prep (transpose / bias reshape), then fused kernel call.
    params = prepare_params(w1, b1, w2, b2)
    out = feature_extractor(x, *params)
    out = jax.block_until_ready(out)

    ref = _reference(x, w1, b1, w2, b2)
    assert out.shape == (batch, hidden_2)
    assert jnp.allclose(out, ref, atol=1e-4, rtol=1e-4), "mismatch vs reference"

    print("KERNEL_OK")
</pallas_src>

<mosaic_0001>
module attributes {stable_mosaic.version = 11 : i64} {
  func.func @_mlp_kernel(%arg0: i32, %arg1: memref<8x310xf32, #tpu.memory_space<vmem>>, %arg2: memref<310x64xf32, #tpu.memory_space<vmem>>, %arg3: memref<1x64xf32, #tpu.memory_space<vmem>>, %arg4: memref<64x64xf32, #tpu.memory_space<vmem>>, %arg5: memref<1x64xf32, #tpu.memory_space<vmem>>, %arg6: memref<8x64xf32, #tpu.memory_space<vmem>>) attributes {dimension_semantics = [#tpu.dimension_semantics<parallel>], iteration_bounds = array<i64: 1>, scalar_prefetch = 0 : i64, scratch_operands = 0 : i64, tpu.core_type = #tpu.core_type<tc>, window_params = [{transform_indices = @transform_0, window_bounds = array<i64: 8, 310>}, {pipeline_mode = #tpu.pipeline_mode<synchronous>, transform_indices = @transform_1, window_bounds = array<i64: 310, 64>}, {pipeline_mode = #tpu.pipeline_mode<synchronous>, transform_indices = @transform_2, window_bounds = array<i64: 1, 64>}, {pipeline_mode = #tpu.pipeline_mode<synchronous>, transform_indices = @transform_3, window_bounds = array<i64: 64, 64>}, {pipeline_mode = #tpu.pipeline_mode<synchronous>, transform_indices = @transform_4, window_bounds = array<i64: 1, 64>}, {transform_indices = @transform_5, window_bounds = array<i64: 8, 64>}]} {
    %c0 = arith.constant 0 : index
    %c0_0 = arith.constant 0 : index
    %0 = vector.load %arg1[%c0, %c0_0] : memref<8x310xf32, #tpu.memory_space<vmem>>, vector<8x310xf32>
    %c0_1 = arith.constant 0 : index
    %c0_2 = arith.constant 0 : index
    %1 = vector.load %arg2[%c0_1, %c0_2] : memref<310x64xf32, #tpu.memory_space<vmem>>, vector<310x64xf32>
    %cst = arith.constant dense<0.000000e+00> : vector<8x64xf32>
    %2 = tpu.matmul %0, %1, %cst {dimension_numbers = #tpu.dot_dimension_numbers<[1], [0], [0], [1], [0, 0, 1, 1], [], []>} : vector<8x310xf32>, vector<310x64xf32>, vector<8x64xf32> -> vector<8x64xf32>
    %c0_3 = arith.constant 0 : index
    %c0_4 = arith.constant 0 : index
    %3 = vector.load %arg3[%c0_3, %c0_4] : memref<1x64xf32, #tpu.memory_space<vmem>>, vector<1x64xf32>
    %4 = vector.broadcast %3 : vector<1x64xf32> to vector<8x64xf32>
    %5 = arith.addf %2, %4 : vector<8x64xf32>
    %cst_5 = arith.constant 0.000000e+00 : f32
    %6 = vector.broadcast %cst_5 : f32 to vector<8x64xf32>
    %7 = arith.maximumf %5, %6 : vector<8x64xf32>
    %c0_6 = arith.constant 0 : index
    %c0_7 = arith.constant 0 : index
    %8 = vector.load %arg4[%c0_6, %c0_7] : memref<64x64xf32, #tpu.memory_space<vmem>>, vector<64x64xf32>
    %cst_8 = arith.constant dense<0.000000e+00> : vector<8x64xf32>
    %9 = tpu.matmul %7, %8, %cst_8 {dimension_numbers = #tpu.dot_dimension_numbers<[1], [0], [0], [1], [0, 0, 1, 1], [], []>} : vector<8x64xf32>, vector<64x64xf32>, vector<8x64xf32> -> vector<8x64xf32>
    %c0_9 = arith.constant 0 : index
    %c0_10 = arith.constant 0 : index
    %10 = vector.load %arg5[%c0_9, %c0_10] : memref<1x64xf32, #tpu.memory_space<vmem>>, vector<1x64xf32>
    %11 = vector.broadcast %10 : vector<1x64xf32> to vector<8x64xf32>
    %12 = arith.addf %9, %11 : vector<8x64xf32>
    %cst_11 = arith.constant 0.000000e+00 : f32
    %13 = vector.broadcast %cst_11 : f32 to vector<8x64xf32>
    %14 = arith.maximumf %12, %13 : vector<8x64xf32>
    %c0_12 = arith.constant 0 : index
    %c0_13 = arith.constant 0 : index
    %15 = vector.load %arg6[%c0_12, %c0_13] : memref<8x64xf32, #tpu.memory_space<vmem>>, vector<8x64xf32>
    tpu.vector_store %arg6[%c0_12, %c0_13], %14 {strides = array<i32>} : memref<8x64xf32, #tpu.memory_space<vmem>>, vector<8x64xf32>,
    return
  }
  func.func @transform_0(%arg0: i32) -> (i32, i32) {
    %c0_i32 = arith.constant 0 : i32
    %c0_i32_0 = arith.constant 0 : i32
    return %arg0, %c0_i32 : i32, i32
  }
  func.func @transform_1(%arg0: i32) -> (i32, i32) {
    %c0_i32 = arith.constant 0 : i32
    %c0_i32_0 = arith.constant 0 : i32
    %c0_i32_1 = arith.constant 0 : i32
    return %c0_i32, %c0_i32_0 : i32, i32
  }
  func.func @transform_2(%arg0: i32) -> (i32, i32) {
    %c0_i32 = arith.constant 0 : i32
    %c0_i32_0 = arith.constant 0 : i32
    %c0_i32_1 = arith.constant 0 : i32
    return %c0_i32, %c0_i32_0 : i32, i32
  }
  func.func @transform_3(%arg0: i32) -> (i32, i32) {
    %c0_i32 = arith.constant 0 : i32
    %c0_i32_0 = arith.constant 0 : i32
    %c0_i32_1 = arith.constant 0 : i32
    return %c0_i32, %c0_i32_0 : i32, i32
  }
  func.func @transform_4(%arg0: i32) -> (i32, i32) {
    %c0_i32 = arith.constant 0 : i32
    %c0_i32_0 = arith.constant 0 : i32
    %c0_i32_1 = arith.constant 0 : i32
    return %c0_i32, %c0_i32_0 : i32, i32
  }
  func.func @transform_5(%arg0: i32) -> (i32, i32) {
    %c0_i32 = arith.constant 0 : i32
    %c0_i32_0 = arith.constant 0 : i32
    return %arg0, %c0_i32 : i32, i32
  }
}

</mosaic_0001>

<bundles_post_ra>
// kernel: feature_extractor.1
= control target key start
LH: loop header
LB: loop body
LE: loop exit
PB: predicated region body
PF: predicated region fallthrough
CT: control target
= control target key end

     0   :  { %v498_v7 = vmov 0.0|0.0   ;;  %vm499_vm0 = vmmov 0   ;;  %v500_v13 = vmov 0.0   ;;  %s712_s0 = inlined_call_operand.vmem [shape: f32[8,310], index: 0, kind: input, shape index: {}]   ;;  %s713_s1 = inlined_call_operand.vmem [shape: f32[310,64], index: 1, kind: input, shape index: {}]   ;;  %s714_s2 = inlined_call_operand.vmem [shape: f32[1,64], index: 2, kind: input, shape index: {}]   ;;  %s715_s3 = inlined_call_operand.vmem [shape: f32[64,64], index: 3, kind: input, shape index: {}]   ;;  %s716_s4 = inlined_call_operand.vmem [shape: f32[1,64], index: 4, kind: input, shape index: {}]   ;;  %s717_s5 = inlined_call_operand.hbm [shape: f32[8,64], index: 5, kind: output, shape index: {}]  }
   0x1   :  { %v40_v0 = vld [vmem:[%s713_s1 + $0x80] sm:$0xff]  ;;  %v41_v1 = vld [vmem:[%s713_s1 + $0x88] sm:$0xff]  ;;  %v42_v5 = vld [vmem:[%s713_s1 + $0x90] sm:$0xff]  ;;  %449 = vmatprep.subr.bf16.mxu1 %v498_v7  ;;  %395 = vmatprep.mubr.msk.f32.mxu1 %vm499_vm0, %v500_v13 }
   0x2   :  { %v24_v2 = vld [vmem:[%s713_s1] sm:$0xff]  ;;  %v417_v3 = vpack.c.bf16 %v41_v1, %v40_v0  ;;  %v25_v4 = vld [vmem:[%s713_s1 + $0x8] sm:$0xff]  ;;  %v43_v6 = vld [vmem:[%s713_s1 + $0x98] sm:$0xff] }
   0x3   :  { %v419_v8 = vpack.c.bf16 %v25_v4, %v24_v2  ;;  %v421_v9 = vpack.c.bf16 %v43_v6, %v42_v5  ;;  %v26_v10 = vld [vmem:[%s713_s1 + $0x10] sm:$0xff]  ;;  %v27_v11 = vld [vmem:[%s713_s1 + $0x18] sm:$0xff]  ;;  %v44_v12 = vld [vmem:[%s713_s1 + $0xa0] sm:$0xff] }
   0x4   :  { %418 = vmatprep.subr.bf16.mxu0 %v417_v3  ;;  %v45_v14 = vld [vmem:[%s713_s1 + $0xa8] sm:$0xff]  ;;  %v423_v15 = vpack.c.bf16 %v27_v11, %v26_v10  ;;  %v28_v17 = vld [vmem:[%s713_s1 + $0x20] sm:$0xff]  ;;  %v46_v19 = vld [vmem:[%s713_s1 + $0xb0] sm:$0xff] }
   0x5   :  { %420 = vmatpush3.bf16.msra.mxu0 %v419_v8  ;;  %v425_v16 = vpack.c.bf16 %v45_v14, %v44_v12  ;;  %v29_v18 = vld [vmem:[%s713_s1 + $0x28] sm:$0xff]  ;;  %v47_v20 = vld [vmem:[%s713_s1 + $0xb8] sm:$0xff]  ;;  %v56_v22 = vld [vmem:[%s713_s1 + $0x100] sm:$0xff] }
   0x6   :  { %422 = vmatprep.subr.bf16.mxu0 %v421_v9  ;;  %v427_v21 = vpack.c.bf16 %v29_v18, %v28_v17  ;;  %v57_v23 = vld [vmem:[%s713_s1 + $0x108] sm:$0xff]  ;;  %v429_v24 = vpack.c.bf16 %v47_v20, %v46_v19  ;;  %v30_v25 = vld [vmem:[%s713_s1 + $0x30] sm:$0xff]  ;;  %v31_v26 = vld [vmem:[%s713_s1 + $0x38] sm:$0xff] }
   0x7   :  { %v48_v27 = vld [vmem:[%s713_s1 + $0xc0] sm:$0xff]  ;;  %v450_v28 = vpack.c.bf16 %v57_v23, %v56_v22  ;;  %v49_v29 = vld [vmem:[%s713_s1 + $0xc8] sm:$0xff]  ;;  %v58_v30 = vld [vmem:[%s713_s1 + $0x110] sm:$0xff]  ;;  %v431_v33 = vpack.c.bf16 %v31_v26, %v30_v25 }
   0x8   :  { %v59_v31 = vld [vmem:[%s713_s1 + $0x118] sm:$0xff]  ;;  %v22_v34 = vld [vmem:[%s712_s0 + $0x8] sm:$0xff]  ;;  %v60_v35 = vld [vmem:[%s713_s1 + $0x120] sm:$0xff]  ;;  %v433_v37 = vpack.c.bf16 %v49_v29, %v48_v27 }
   0x9   :  { %424 = vmatpush3.bf16.msra.mxu0 %v423_v15  ;;  %451 = vmatpush3.bf16.msra.mxu1 %v450_v28  ;;  %v453_v32 = vpack.c.bf16 %v59_v31, %v58_v30  ;;  %v61_v36 = vld [vmem:[%s713_s1 + $0x128] sm:$0xff]  ;;  %v32_v38 = vld [vmem:[%s713_s1 + $0x40] sm:$0xff]  ;;  %v50_v40 = vld [vmem:[%s713_s1 + $0xd0] sm:$0xff] }
   0xa   :  { %426 = vmatprep.subr.bf16.mxu0 %v425_v16  ;;  %452 = vmatprep.subr.bf16.mxu1 %v498_v7  ;;  %v33_v39 = vld [vmem:[%s713_s1 + $0x48] sm:$0xff]  ;;  %v51_v41 = vld [vmem:[%s713_s1 + $0xd8] sm:$0xff]  ;;  %v456_v42 = vpack.c.bf16 %v61_v36, %v60_v35 }
   0xb   :  { %142 = vmatprep.mubr.f32.mxu0 %v22_v34 }
   0xd   :  { %428 = vmatpush3.bf16.msra.mxu0 %v427_v21  ;;  %454 = vmatpush3.bf16.msra.mxu1 %v453_v32 }
   0xe   :  { %430 = vmatprep.subr.bf16.mxu0 %v429_v24 }
   0xf   :  { %10 = vsyncpa [#allocation3], 0  ;;  %v435_v43 = vpack.c.bf16 %v33_v39, %v32_v38  ;;  %455 = vmatprep.subr.bf16.mxu1 %v498_v7  ;;  %v437_v44 = vpack.c.bf16 %v51_v41, %v50_v40  ;;  %v34_v45 = vld [vmem:[%s713_s1 + $0x50] sm:$0xff]  ;;  %v35_v46 = vld [vmem:[%s713_s1 + $0x58] sm:$0xff]  ;;  %vm74_vm1 = vcmask 1045504   ;;  %vm70_vm2 = vcmask 441344  }
  0x10   :  { %v52_v47 = vld [vmem:[%s713_s1 + $0xe0] sm:$0xff]  ;;  %v53_v48 = vld [vmem:[%s713_s1 + $0xe8] sm:$0xff]  ;;  %v439_v51 = vpack.c.bf16 %v35_v46, %v34_v45  ;;  %v62_v52 = vld [vmem:[%s713_s1 + $0x130] sm:$0x3f]  ;;  %vm234_vm3 = vcmask 523264  }
  0x11   :  { %432 = vmatpush3.bf16.msra.mxu0 %v431_v33  ;;  %457 = vmatpush3.bf16.msra.mxu1 %v456_v42  ;;  %v219_v49 = vld [vmem:[%s715_s3] sm:$0xff]  ;;  %v220_v50 = vld [vmem:[%s715_s3 + $0x8] sm:$0xff]  ;;  %v441_v53 = vpack.c.bf16 %v53_v48, %v52_v47  ;;  %v23_v56 = vld [vmem:[%s712_s0 + $0x10] sm:$0xff] }
  0x12   :  { %434 = vmatprep.subr.bf16.mxu0 %v433_v37  ;;  %393 = vmatprep.subr.mxu1 %v500_v13  ;;  %v36_v54 = vld [vmem:[%s713_s1 + $0x60] sm:$0xff]  ;;  %v37_v55 = vld [vmem:[%s713_s1 + $0x68] sm:$0xff]  ;;  %v54_v57 = vld [vmem:[%s713_s1 + $0xf0] sm:$0xff]  ;;  %v459_v59 = vpack.c.bf16 %v220_v50, %v219_v49 }
  0x13   :  { %v55_v58 = vld [vmem:[%s713_s1 + $0xf8] sm:$0xff]  ;;  %v221_v60 = vld [vmem:[%s715_s3 + $0x10] sm:$0xff]  ;;  %v443_v62 = vpack.c.bf16 %v37_v55, %v36_v54  ;;  %v21_v4 = vld [vmem:[%s712_s0] sm:$0xff] }
  0x14   :  { %v222_v61 = vld [vmem:[%s715_s3 + $0x18] sm:$0xff]  ;;  %v445_v63 = vpack.c.bf16 %v55_v58, %v54_v57  ;;  %v38_v0 = vld [vmem:[%s713_s1 + $0x70] sm:$0xff]  ;;  %v223_v5 = vld [vmem:[%s715_s3 + $0x20] sm:$0xff] }
  0x15   :  { %436 = vmatpush3.bf16.msra.mxu0 %v435_v43  ;;  %394 = vmatpush3.msk.msra.mxu1 %vm74_vm1, %v62_v52  ;;  %v39_v1 = vld [vmem:[%s713_s1 + $0x78] sm:$0xff]  ;;  %v462_v2 = vpack.c.bf16 %v222_v61, %v221_v60  ;;  %v224_v6 = vld [vmem:[%s715_s3 + $0x28] sm:$0xff]  ;;  %v225_v9 = vld [vmem:[%s715_s3 + $0x30] sm:$0xff] }
  0x16   :  { %438 = vmatprep.subr.bf16.mxu0 %v437_v44  ;;  %396 = vmatmul.mubr.msk.f32.vlgmr.msra.gmra.mrb[0].mxu1 %vm70_vm2, %v23_v56  ;;  %v447_v3 = vpack.c.bf16 %v39_v1, %v38_v0  ;;  %v465_v8 = vpack.c.bf16 %v224_v6, %v223_v5  ;;  %v226_v10 = vld [vmem:[%s715_s3 + $0x38] sm:$0xff]  ;;  %v324_v16 = vld [vmem:[%s714_s2] ss:$0 sm:$0xff]  ;;  %s501_s3 = smov [#allocation2]  }
  0x17   :  { %458 = vmatprep.subr.bf16.mxu1 %v498_v7  ;;  %414 = vmatprep.mubr.msk.f32.mxu1 %vm499_vm0, %v500_v13  ;;  %v468_v11 = vpack.c.bf16 %v226_v10, %v225_v9  ;;  %v327_v20 = vld [vmem:[%s716_s4] ss:$0 sm:$0xff]  ;;  %s316_s20 = sshll.u32 %s501_s3, 4  ;;  %s317_s20 = int_to_ptr.vmem [resolvable:$true] %s316_s20 }
  0x18   :  { %460 = vmatpush3.bf16.msra.mxu1 %v459_v59  ;;  %s474_s21 = scalar_lea.vmem %s317_s20, 128  ;;  %p479_p1 = scmp.lt.s32.totalorder %s317_s20, %s317_s20 }
  0x19   :  { %440 = vmatpush3.bf16.msra.mxu0 %v439_v51  ;;  %461 = vmatprep.subr.bf16.mxu1 %v498_v7  ;;  %p475_p0 = scmp.ne.s32.totalorder %s317_s20, %s474_s21  ;;  %p480_p2 = scmp.lt.s32.totalorder %s474_s21, %s474_s21 }
  0x1a   :  { %442 = vmatprep.subr.bf16.mxu0 %v441_v53 }
  0x1b   :  { %p481_p3 = por %p480_p2, %p479_p1 }
  0x1c   :  { %463 = vmatpush3.bf16.msra.mxu1 %v462_v2 }
  0x1d   :  { %444 = vmatpush3.bf16.msra.mxu0 %v443_v62  ;;  %464 = vmatprep.subr.bf16.mxu1 %v498_v7  ;;  %p482_p4 = pnand %p481_p3, %p475_p0 }
  0x1e   :  { %446 = vmatprep.subr.bf16.mxu0 %v445_v63 }
  0x20   :  { %466 = vmatpush3.bf16.msra.mxu1 %v465_v8 }
  0x21   :  { %448 = vmatpush3.bf16.msra.mxu0 %v447_v3  ;;  %467 = vmatprep.subr.bf16.mxu1 %v498_v7 }
  0x24   :  { %143 = vmatmul.mubr.f32.vlgmr.msra.gmra.mrb[0].mxu0 %v21_v4  ;;  %469 = vmatpush3.bf16.msra.mxu1 %v468_v11 }
  0xe9   :  { %v214_v12 = vpop.f32.mrb[0].mxu1 }
  0xea   :  { %v397_v13 = vpop.f32.mrb[1].mxu1 }
  0xf7   :  { %v361_v14 = vpop.f32.mrb[0].mxu0 }
  0xf8   :  { %v362_v15 = vpop.f32.mrb[1].mxu0 }
  0xf9   :  { %v363_v17 = vadd.f32 %v362_v15, %v361_v14 }
  0xfb   :  { %v145_v7 = vadd.f32 %v363_v17, %v324_v16 }
  0xfd   :  { %v215_v18 = vadd.f32 %v214_v12, %v145_v7 }
  0xff   :  { %v218_v19 = vmax.f32 %v215_v18, 0.0 }
 0x101   :  { %415 = vmatmul.mubr.msk.f32.vlgmr.msra.gmra.mrb[2].mxu1 %vm234_vm3, %v218_v19 }
 0x1d4   :  { %v304_v21 = vpop.f32.mrb[2].mxu1 }
 0x1d5   :  { %v305_v22 = vadd.f32 %v327_v20, %v304_v21  ;;  %v416_v23 = vpop.f32.mrb[3].mxu1 }
 0x1d7   :  { %v308_v24 = vmax.f32 %v305_v22, 0.0 }
 0x1d9   :  { %309 = vst.msk [vmem:[#allocation2] sm:$0xff] %vm234_vm3, %v308_v24 }
 0x1da   :  { %485 = shalt.err (!%p482_p4)
}
 0x1db   :  { %s486_s23 = scalar_lea.hbm %s717_s5, 128 }
 0x1dc   :  { %p487_p5 = scmp.ne.s32.totalorder %s717_s5, %s486_s23  ;;  %p490_p6 = scmp.lt.u32.totalorder %s486_s23, %s717_s5 }
 0x1de   :  { %p492_p7 = pnand %p490_p6, %p487_p5 }
 0x1e0   :  { %495 = shalt.err (!%p492_p7)
}
 0x1e1   :  { %319 = dma.vmem_to_hbm [thread:$0]  %s317_s20, 128, %s717_s5, [#allocation3]  }
 0x1e2   :  { %496 = dma.done.wait [#allocation3], 128  }
 0x1e3   :  { %497 = vsyncadd [#allocation3], 4294967168 }
 0x1e4   :  { %323 = vsyncpa [#allocation3], 1 }

</bundles_post_ra>
